<compile_context>
chip_gen: v7x
topology: tpu7x:2x2x1
jax: 0.10.0
libtpu: 0.0.40
codegen_flags: <defaults>
</compile_context>

<pallas_src>
import jax
import jax.numpy as jnp
from jax.experimental import pallas as pl
from jax.experimental.pallas import tpu as pltpu


def _round_up(x, m):
    return ((x + m - 1) // m) * m


def _pad_to(a, shape):
    pads = [(0, t - s) for s, t in zip(a.shape, shape)]
    if all(p == (0, 0) for p in pads):
        return a
    return jnp.pad(a, pads)


# ---------------------------------------------------------------------------
# Kernels
# ---------------------------------------------------------------------------

def _linear_kernel_tiled(x_ref, w_ref, b_ref, o_ref):
    """General (M, N, K) path.

    x_ref: (tm, tk) compute dtype (bf16)      activation tile
    w_ref: (tk, tn) compute dtype (bf16)      pre-transposed weight tile -> no vxpose
    b_ref: (1,  tn) f32                       bias tile
    o_ref: (tm, tn) f32                       output tile; block index ignores k, so it
                                              is VMEM-resident across the K axis and is
                                              used directly as the accumulator.
    """
    k = pl.program_id(2)

    @pl.when(k == 0)
    def _():
        o_ref[...] = jnp.broadcast_to(b_ref[...], o_ref.shape).astype(o_ref.dtype)

    o_ref[...] += jnp.dot(x_ref[...], w_ref[...],
                          preferred_element_type=jnp.float32)


def _linear_kernel_single(x_ref, w_ref, b_ref, o_ref):
    """Single-tile fast path: one MXU dot + bias, no K grid / accumulator."""
    o_ref[...] = (jnp.dot(x_ref[...], w_ref[...],
                          preferred_element_type=jnp.float32)
                  + b_ref[...]).astype(o_ref.dtype)


# ---------------------------------------------------------------------------
# One-time parameter preparation (hoisted out of the per-forward hot path)
# ---------------------------------------------------------------------------

def prepare_linear_params(weight, bias, *, compute_dtype=jnp.bfloat16):
    """Prepare nn.Linear params once; cache the result across forward calls.

    * transpose W from PyTorch (out, in) to (in, out) so the MXU feed needs no
      per-tile transpose,
    * cast to the compute dtype (bf16; the kernel accumulates in f32),
    * pad to lane-dense multiples of the N/K tile sizes.
    """
    out_features, in_features = weight.shape
    tn = min(512, _round_up(out_features, 256))   # v6e/v7x MXU is 2x256x256
    tk = min(1024, _round_up(in_features, 256))
    cp = _round_up(out_features, tn)
    fp = _round_up(in_features, tk)

    w_t = _pad_to(weight.T, (fp, cp)).astype(compute_dtype)          # (in, out) layout
    b_p = _pad_to(bias.reshape(1, out_features), (1, cp)).astype(jnp.float32)

    return {
        "w_t": w_t, "b": b_p,
        "in_features": in_features, "out_features": out_features,
        "tn": tn, "tk": tk, "cp": cp, "fp": fp,
        "compute_dtype": compute_dtype,
    }


# ---------------------------------------------------------------------------
# Forward
# ---------------------------------------------------------------------------

def linear_forward(x, params):
    """y = x @ W.T + b (nn.Linear semantics) using prepared params."""
    w_t, b_p = params["w_t"], params["b"]
    in_features, out_features = params["in_features"], params["out_features"]
    tn, tk, cp, fp = params["tn"], params["tk"], params["cp"], params["fp"]
    compute_dtype = params["compute_dtype"]

    batch = x.shape[0]
    assert x.shape[1] == in_features

    # bf16 packs 16 rows per sublane group; keep tm % 16 == 0 and close to the batch
    # so M-padding waste stays small.
    m_align = 16 if compute_dtype == jnp.bfloat16 else 8
    tm = min(512, _round_up(batch, m_align))
    bp = _round_up(batch, tm)

    xp = _pad_to(x, (bp, fp)).astype(compute_dtype)

    # ---- single-tile fast path (e.g. the tiny shipped test 8x32 @ 32x8) ----
    if bp <= tm and cp <= tn and fp <= tk:
        yp = pl.pallas_call(
            _linear_kernel_single,
            out_shape=jax.ShapeDtypeStruct((bp, cp), jnp.float32),
            grid=(1,),
            in_specs=[
                pl.BlockSpec((bp, fp), lambda i: (0, 0)),
                pl.BlockSpec((fp, cp), lambda i: (0, 0)),
                pl.BlockSpec((1, cp), lambda i: (0, 0)),
            ],
            out_specs=pl.BlockSpec((bp, cp), lambda i: (0, 0)),
        )(xp, w_t, b_p)
        return yp[:batch, :out_features]

    # ---- tiled (M, N, K) path ----
    grid = (bp // tm, cp // tn, fp // tk)
    in_bytes = jnp.dtype(compute_dtype).itemsize
    cost = pl.CostEstimate(
        flops=2 * bp * fp * cp,
        transcendentals=0,
        # x is re-read once per N tile, W once per M tile.
        bytes_accessed=(grid[1] * bp * fp * in_bytes
                        + grid[0] * cp * fp * in_bytes
                        + bp * cp * 4 + cp * 4),
    )

    yp = pl.pallas_call(
        _linear_kernel_tiled,
        out_shape=jax.ShapeDtypeStruct((bp, cp), jnp.float32),
        grid_spec=pltpu.PrefetchScalarGridSpec(
            num_scalar_prefetch=0,
            grid=grid,
            in_specs=[
                pl.BlockSpec((tm, tk), lambda i, j, k: (i, k)),   # x tile (bf16)
                pl.BlockSpec((tk, tn), lambda i, j, k: (k, j)),   # W tile (in, out), bf16
                pl.BlockSpec((1, tn), lambda i, j, k: (0, j)),    # bias tile (f32)
            ],
            out_specs=pl.BlockSpec((tm, tn), lambda i, j, k: (i, j)),
        ),
        compiler_params=pltpu.CompilerParams(
            dimension_semantics=("parallel", "parallel", "arbitrary"),
            vmem_limit_bytes=48 * 1024 * 1024,   # fits v7x (64 MiB) and v5e/v6e (128 MiB)
        ),
        cost_estimate=cost,
    )(xp, w_t, b_p)

    return yp[:batch, :out_features]


# ---------------------------------------------------------------------------
# Test
# ---------------------------------------------------------------------------

if __name__ == "__main__":
    key = jax.random.PRNGKey(0)

    # --- small shapes matching the module's dummy_x: (batch_size, n_features) ---
    batch_size, n_features, n_classes = 8, 32, 8
    k1, k2, k3, k4, k5, k6 = jax.random.split(key, 6)

    x = jax.random.normal(k1, (batch_size, n_features), dtype=jnp.float32)
    weight = jax.random.normal(k2, (n_classes, n_features), dtype=jnp.float32) * 0.1
    bias = jax.random.normal(k3, (n_classes,), dtype=jnp.float32) * 0.1

    params = prepare_linear_params(weight, bias)          # one-time weight prep
    y = jax.block_until_ready(linear_forward(x, params))  # single-tile fast path

    y_ref = jnp.dot(x, weight.T, precision=jax.lax.Precision.HIGHEST) + bias
    assert y.shape == (batch_size, n_classes)
    # bf16 inputs + f32 accumulation vs f32 reference: relaxed tolerance.
    assert jnp.allclose(y, y_ref, atol=2e-2, rtol=2e-2)

    # --- larger shapes to exercise the tiled (M, N, K) accumulation path ---
    B2, F2, C2 = 1024, 2048, 768
    x2 = jax.random.normal(k4, (B2, F2), dtype=jnp.float32)
    w2 = jax.random.normal(k5, (C2, F2), dtype=jnp.float32) * 0.05
    b2 = jax.random.normal(k6, (C2,), dtype=jnp.float32) * 0.1

    params2 = prepare_linear_params(w2, b2)
    y2 = jax.block_until_ready(linear_forward(x2, params2))   # grid (2, 2, 2)

    # Reference on bf16-rounded inputs (same data the MXU sees, f32 math) -> tight tol.
    x2r = x2.astype(jnp.bfloat16).astype(jnp.float32)
    w2r = w2.astype(jnp.bfloat16).astype(jnp.float32)
    y2_ref = jnp.dot(x2r, w2r.T, precision=jax.lax.Precision.HIGHEST) + b2
    assert y2.shape == (B2, C2)
    assert jnp.allclose(y2, y2_ref, atol=1e-2, rtol=1e-2)

    print("KERNEL_OK")
</pallas_src>

<mosaic_0001>
module attributes {stable_mosaic.version = 11 : i64} {
  func.func @_linear_kernel_single(%arg0: i32, %arg1: memref<16x256xbf16, #tpu.memory_space<vmem>>, %arg2: memref<256x256xbf16, #tpu.memory_space<vmem>>, %arg3: memref<1x256xf32, #tpu.memory_space<vmem>>, %arg4: memref<16x256xf32, #tpu.memory_space<vmem>>) attributes {dimension_semantics = [#tpu.dimension_semantics<arbitrary>], iteration_bounds = array<i64: 1>, scalar_prefetch = 0 : i64, scratch_operands = 0 : i64, tpu.core_type = #tpu.core_type<tc>, window_params = [{pipeline_mode = #tpu.pipeline_mode<synchronous>, transform_indices = @transform_0, window_bounds = array<i64: 16, 256>}, {pipeline_mode = #tpu.pipeline_mode<synchronous>, transform_indices = @transform_1, window_bounds = array<i64: 256, 256>}, {pipeline_mode = #tpu.pipeline_mode<synchronous>, transform_indices = @transform_2, window_bounds = array<i64: 1, 256>}, {pipeline_mode = #tpu.pipeline_mode<synchronous>, transform_indices = @transform_3, window_bounds = array<i64: 16, 256>}]} {
    %c0 = arith.constant 0 : index
    %c0_0 = arith.constant 0 : index
    %0 = vector.load %arg1[%c0, %c0_0] : memref<16x256xbf16, #tpu.memory_space<vmem>>, vector<16x256xbf16>
    %c0_1 = arith.constant 0 : index
    %c0_2 = arith.constant 0 : index
    %1 = vector.load %arg2[%c0_1, %c0_2] : memref<256x256xbf16, #tpu.memory_space<vmem>>, vector<256x256xbf16>
    %cst = arith.constant dense<0.000000e+00> : vector<16x256xf32>
    %2 = tpu.matmul %0, %1, %cst {dimension_numbers = #tpu.dot_dimension_numbers<[1], [0], [0], [1], [0, 0, 1, 1], [], []>} : vector<16x256xbf16>, vector<256x256xbf16>, vector<16x256xf32> -> vector<16x256xf32>
    %c0_3 = arith.constant 0 : index
    %c0_4 = arith.constant 0 : index
    %3 = vector.load %arg3[%c0_3, %c0_4] : memref<1x256xf32, #tpu.memory_space<vmem>>, vector<1x256xf32>
    %4 = vector.broadcast %3 : vector<1x256xf32> to vector<16x256xf32>
    %5 = arith.addf %2, %4 : vector<16x256xf32>
    %c0_5 = arith.constant 0 : index
    %c0_6 = arith.constant 0 : index
    %6 = vector.load %arg4[%c0_5, %c0_6] : memref<16x256xf32, #tpu.memory_space<vmem>>, vector<16x256xf32>
    tpu.vector_store %arg4[%c0_5, %c0_6], %5 {strides = array<i32>} : memref<16x256xf32, #tpu.memory_space<vmem>>, vector<16x256xf32>,
    return
  }
  func.func @transform_0(%arg0: i32) -> (i32, i32) {
    %c0_i32 = arith.constant 0 : i32
    %c0_i32_0 = arith.constant 0 : i32
    %c0_i32_1 = arith.constant 0 : i32
    return %c0_i32, %c0_i32_0 : i32, i32
  }
  func.func @transform_1(%arg0: i32) -> (i32, i32) {
    %c0_i32 = arith.constant 0 : i32
    %c0_i32_0 = arith.constant 0 : i32
    %c0_i32_1 = arith.constant 0 : i32
    return %c0_i32, %c0_i32_0 : i32, i32
  }
  func.func @transform_2(%arg0: i32) -> (i32, i32) {
    %c0_i32 = arith.constant 0 : i32
    %c0_i32_0 = arith.constant 0 : i32
    %c0_i32_1 = arith.constant 0 : i32
    return %c0_i32, %c0_i32_0 : i32, i32
  }
  func.func @transform_3(%arg0: i32) -> (i32, i32) {
    %c0_i32 = arith.constant 0 : i32
    %c0_i32_0 = arith.constant 0 : i32
    %c0_i32_1 = arith.constant 0 : i32
    return %c0_i32, %c0_i32_0 : i32, i32
  }
}

</mosaic_0001>

<bundles_post_ra>
// kernel: tpu_custom_call.1
= control target key start
LH: loop header
LB: loop body
LE: loop exit
PB: predicated region body
PF: predicated region fallthrough
CT: control target
= control target key end

     0   :  { %8 = vsyncpa [#allocation3], 0  ;;  %s554_s0 = inlined_call_operand.hbm [shape: bf16[16,256], index: 0, kind: input, shape index: {}]   ;;  %s555_s1 = inlined_call_operand.hbm [shape: bf16[256,256], index: 1, kind: input, shape index: {}]   ;;  %s556_s2 = inlined_call_operand.vmem [shape: f32[1,256], index: 2, kind: input, shape index: {}]   ;;  %s557_s3 = inlined_call_operand.hbm [shape: f32[16,256], index: 3, kind: output, shape index: {}]  }
   0x1   :  { %9 = vsyncpa [#allocation6], 0 }
   0x2   :  { %10 = vsyncpa [#allocation4], 0  ;;  %s488_s12 = smov [#allocation2]   ;;  %s416_s16 = scalar_lea.hbm %s554_s0, 256 }
   0x3   :  { %s16_s13 = sshll.u32 %s488_s12, 4  ;;  %p417_p0 = scmp.ne.s32.totalorder %s554_s0, %s416_s16  ;;  %s17_s13 = int_to_ptr.vmem [resolvable:$true] %s16_s13 }
   0x4   :  { %p420_p1 = scmp.lt.u32.totalorder %s416_s16, %s554_s0 }
   0x6   :  { %p422_p2 = pnand %p420_p1, %p417_p0 }
   0x8   :  { %425 = shalt.err (!%p422_p2)
}
   0x9   :  { %s426_s21 = scalar_lea.vmem %s17_s13, 256  ;;  %p431_p4 = scmp.lt.s32.totalorder %s17_s13, %s17_s13 }
   0xa   :  { %p427_p3 = scmp.ne.s32.totalorder %s17_s13, %s426_s21  ;;  %p432_p5 = scmp.lt.s32.totalorder %s426_s21, %s426_s21 }
   0xc   :  { %p433_p6 = por %p432_p5, %p431_p4 }
   0xe   :  { %p434_p7 = pnand %p433_p6, %p427_p3 }
  0x10   :  { %437 = shalt.err (!%p434_p7)
}
  0x11   :  { %s489_s22 = smov 128   ;;  %s490_s23 = smov 8  }
  0x12   :  { %22 = dma.hbm_to_vmem [thread:$0]  %s554_s0, 256, %s17_s13, [#allocation3], %s489_s22, %s489_s22, %s490_s23  }
  0x13   :  { %s491_s26 = smov [#allocation5]   ;;  %s438_s30 = scalar_lea.hbm %s555_s1, 4096 }
  0x14   :  { %s28_s27 = sshll.u32 %s491_s26, 4  ;;  %p439_p8 = scmp.ne.s32.totalorder %s555_s1, %s438_s30  ;;  %s29_s27 = int_to_ptr.vmem [resolvable:$true] %s28_s27 }
  0x15   :  { %p442_p9 = scmp.lt.u32.totalorder %s438_s30, %s555_s1 }
  0x17   :  { %p444_p10 = pnand %p442_p9, %p439_p8 }
  0x19   :  { %447 = shalt.err (!%p444_p10)
}
  0x1a   :  { %s448_s8 = scalar_lea.vmem %s29_s27, 4096  ;;  %p453_p12 = scmp.lt.s32.totalorder %s29_s27, %s29_s27 }
  0x1b   :  { %p449_p11 = scmp.ne.s32.totalorder %s29_s27, %s448_s8  ;;  %p454_p13 = scmp.lt.s32.totalorder %s448_s8, %s448_s8 }
  0x1d   :  { %p455_p0 = por %p454_p13, %p453_p12 }
  0x1f   :  { %p456_p1 = pnand %p455_p0, %p449_p11 }
  0x21   :  { %459 = shalt.err (!%p456_p1)
}
  0x22   :  { %34 = dma.hbm_to_vmem [thread:$0]  %s555_s1, 4096, %s29_s27, [#allocation6], %s489_s22, %s489_s22, %s490_s23  }
  0x23   :  { %482 = dma.done.wait [#allocation3], 256  }
  0x24   :  { %483 = vsyncadd [#allocation3], 4294967040 }
  0x25   :  { %484 = dma.done.wait [#allocation6], 4096  }
  0x26   :  { %485 = vsyncadd [#allocation6], 4294963200  ;;  %v365_v0 = vld [vmem:[#allocation5 + $0x4] ss:$8 sps:$4 sm:$0xff]   ;;  %v367_v1 = vld [vmem:[#allocation5] ss:$8 sps:$4 sm:$0xff]   ;;  %v79_v34 = vlaneseq }
  0x27   :  { %259 = vmatprep.subr.bf16.mxu0 %v365_v0  ;;  %v368_v2 = vld [vmem:[#allocation5 + $0x14] ss:$8 sps:$4 sm:$0xff]   ;;  %v370_v3 = vld [vmem:[#allocation5 + $0x10] ss:$8 sps:$4 sm:$0xff]   ;;  %v371_v4 = vld [vmem:[#allocation5 + $0x24] ss:$8 sps:$4 sm:$0xff]  }
  0x28   :  { %260 = vmatpush1.bf16.msra.mxu0 %v367_v1  ;;  %v373_v5 = vld [vmem:[#allocation5 + $0x20] ss:$8 sps:$4 sm:$0xff]   ;;  %v374_v6 = vld [vmem:[#allocation5 + $0x34] ss:$8 sps:$4 sm:$0xff]   ;;  %v376_v7 = vld [vmem:[#allocation5 + $0x30] ss:$8 sps:$4 sm:$0xff]  }
  0x29   :  { %261 = vmatprep.subr.bf16.mxu0 %v368_v2  ;;  %v377_v8 = vld [vmem:[#allocation5 + $0x44] ss:$8 sps:$4 sm:$0xff]   ;;  %v379_v9 = vld [vmem:[#allocation5 + $0x40] ss:$8 sps:$4 sm:$0xff]   ;;  %v380_v10 = vld [vmem:[#allocation5 + $0x54] ss:$8 sps:$4 sm:$0xff]  }
  0x2a   :  { %v382_v11 = vld [vmem:[#allocation5 + $0x50] ss:$8 sps:$4 sm:$0xff]   ;;  %v383_v12 = vld [vmem:[#allocation5 + $0x64] ss:$8 sps:$4 sm:$0xff]   ;;  %v415_v13 = vld [vmem:[#allocation2 + $0x4] ss:$8 sps:$4 sm:$0xff]  }
  0x2b   :  { %v385_v14 = vld [vmem:[#allocation5 + $0x60] ss:$8 sps:$4 sm:$0xff]   ;;  %v386_v15 = vld [vmem:[#allocation5 + $0x74] ss:$8 sps:$4 sm:$0xff]   ;;  %291 = vmatprep.mubr.bf16.mxu0 %v415_v13  ;;  %v388_v16 = vld [vmem:[#allocation5 + $0x70] ss:$8 sps:$4 sm:$0xff]  }
  0x2c   :  { %262 = vmatpush1.bf16.msra.mxu0 %v370_v3  ;;  %v389_v17 = vld [vmem:[#allocation5 + $0x84] ss:$8 sps:$4 sm:$0xff]   ;;  %v391_v18 = vld [vmem:[#allocation5 + $0x80] ss:$8 sps:$4 sm:$0xff]   ;;  %v392_v19 = vld [vmem:[#allocation5 + $0x94] ss:$8 sps:$4 sm:$0xff]  }
  0x2d   :  { %263 = vmatprep.subr.bf16.mxu0 %v371_v4  ;;  %v394_v20 = vld [vmem:[#allocation5 + $0x90] ss:$8 sps:$4 sm:$0xff]   ;;  %v395_v21 = vld [vmem:[#allocation5 + $0xa4] ss:$8 sps:$4 sm:$0xff]   ;;  %v397_v22 = vld [vmem:[#allocation5 + $0xa0] ss:$8 sps:$4 sm:$0xff]  }
  0x2e   :  { %v398_v23 = vld [vmem:[#allocation5 + $0xb4] ss:$8 sps:$4 sm:$0xff]   ;;  %v400_v24 = vld [vmem:[#allocation5 + $0xb0] ss:$8 sps:$4 sm:$0xff]   ;;  %v401_v25 = vld [vmem:[#allocation5 + $0xc4] ss:$8 sps:$4 sm:$0xff]  }
  0x2f   :  { %v403_v26 = vld [vmem:[#allocation5 + $0xc0] ss:$8 sps:$4 sm:$0xff]   ;;  %v404_v27 = vld [vmem:[#allocation5 + $0xd4] ss:$8 sps:$4 sm:$0xff]   ;;  %v406_v28 = vld [vmem:[#allocation5 + $0xd0] ss:$8 sps:$4 sm:$0xff]  }
  0x30   :  { %264 = vmatpush1.bf16.msra.mxu0 %v373_v5  ;;  %v407_v29 = vld [vmem:[#allocation5 + $0xe4] ss:$8 sps:$4 sm:$0xff]   ;;  %v409_v30 = vld [vmem:[#allocation5 + $0xe0] ss:$8 sps:$4 sm:$0xff]   ;;  %v410_v31 = vld [vmem:[#allocation5 + $0xf4] ss:$8 sps:$4 sm:$0xff]  }
  0x31   :  { %265 = vmatprep.subr.bf16.mxu0 %v374_v6  ;;  %v412_v32 = vld [vmem:[#allocation5 + $0xf0] ss:$8 sps:$4 sm:$0xff]   ;;  %v80_v35 = vshrl.u32 %v79_v34, 7  ;;  %s492_s11 = smov [#allocation7]  }
  0x32   :  { %v413_v33 = vld [vmem:[#allocation2] ss:$8 sps:$4 sm:$0xff]   ;;  %s311_s12 = sshll.u32 %s492_s11, 4  ;;  %s312_s12 = int_to_ptr.vmem [resolvable:$true] %s311_s12 }
  0x33   :  { %v81_v36 = vsub.s32 0, %v80_v35  ;;  %v77_v37 = vld [vmem:[%s556_s2] sm:$0x3]  ;;  %v85_v38 = vsub.s32 1, %v80_v35  ;;  %s460_s13 = scalar_lea.vmem %s312_s12, 512  ;;  %p465_p3 = scmp.lt.s32.totalorder %s312_s12, %s312_s12 }
  0x34   :  { %266 = vmatpush1.bf16.msra.mxu0 %v376_v7  ;;  %p461_p2 = scmp.ne.s32.totalorder %s312_s12, %s460_s13  ;;  %p466_p4 = scmp.lt.s32.totalorder %s460_s13, %s460_s13 }
  0x35   :  { %267 = vmatprep.subr.bf16.mxu0 %v377_v8  ;;  %v82_v39 = vrot.slane %v77_v37, %v81_v36  ;;  %v86_v40 = vrot.slane %v77_v37, %v85_v38 }
  0x36   :  { %p467_p5 = por %p466_p4, %p465_p3 }
  0x38   :  { %268 = vmatpush1.bf16.msra.mxu0 %v379_v9  ;;  %p468_p6 = pnand %p467_p5, %p461_p2 }
  0x39   :  { %269 = vmatprep.subr.bf16.mxu0 %v380_v10 }
  0x3c   :  { %270 = vmatpush1.bf16.msra.mxu0 %v382_v11 }
  0x3d   :  { %271 = vmatprep.subr.bf16.mxu0 %v383_v12 }
  0x40   :  { %272 = vmatpush1.bf16.msra.mxu0 %v385_v14 }
  0x41   :  { %273 = vmatprep.subr.bf16.mxu0 %v386_v15 }
  0x44   :  { %274 = vmatpush1.bf16.msra.mxu0 %v388_v16 }
  0x45   :  { %275 = vmatprep.subr.bf16.mxu0 %v389_v17 }
  0x48   :  { %276 = vmatpush1.bf16.msra.mxu0 %v391_v18 }
  0x49   :  { %277 = vmatprep.subr.bf16.mxu0 %v392_v19 }
  0x4c   :  { %278 = vmatpush1.bf16.msra.mxu0 %v394_v20 }
  0x4d   :  { %279 = vmatprep.subr.bf16.mxu0 %v395_v21 }
  0x50   :  { %280 = vmatpush1.bf16.msra.mxu0 %v397_v22 }
  0x51   :  { %281 = vmatprep.subr.bf16.mxu0 %v398_v23 }
  0x54   :  { %282 = vmatpush1.bf16.msra.mxu0 %v400_v24 }
  0x55   :  { %283 = vmatprep.subr.bf16.mxu0 %v401_v25 }
  0x58   :  { %284 = vmatpush1.bf16.msra.mxu0 %v403_v26 }
  0x59   :  { %285 = vmatprep.subr.bf16.mxu0 %v404_v27 }
  0x5c   :  { %286 = vmatpush1.bf16.msra.mxu0 %v406_v28 }
  0x5d   :  { %287 = vmatprep.subr.bf16.mxu0 %v407_v29 }
  0x60   :  { %288 = vmatpush1.bf16.msra.mxu0 %v409_v30 }
  0x61   :  { %289 = vmatprep.subr.bf16.mxu0 %v410_v31 }
  0x64   :  { %290 = vmatpush1.bf16.msra.mxu0 %v412_v32 }
  0x67   :  { %292 = vmatmul.mubr.bf16.vlgmr.msra.gmra.mrb[0].mxu0 %v413_v33 }
 0x13a   :  { %v293_v41 = vpop.f32.mrb[0].mxu0 }
 0x13b   :  { %v294_v42 = vadd.f32 %v293_v41, %v82_v39  ;;  %v295_v43 = vpop.f32.mrb[1].mxu0 }
 0x13c   :  { %v296_v44 = vadd.f32 %v295_v43, %v86_v40  ;;  %v297_v45 = vpop.f32.mrb[2].mxu0 }
 0x13d   :  { %302 = vst [vmem:[#allocation7] sm:$0xff] %v294_v42  ;;  %v298_v46 = vadd.f32 %v297_v45, %v82_v39  ;;  %v299_v47 = vpop.f32.mrb[3].mxu0 }
 0x13e   :  { %303 = vst [vmem:[#allocation7 + $0x8] sm:$0xff] %v296_v44  ;;  %v300_v48 = vadd.f32 %v299_v47, %v86_v40 }
 0x13f   :  { %304 = vst [vmem:[#allocation7 + $0x10] sm:$0xff] %v298_v46 }
 0x140   :  { %305 = vst [vmem:[#allocation7 + $0x18] sm:$0xff] %v300_v48 }
 0x141   :  { %471 = shalt.err (!%p468_p6)
}
 0x142   :  { %s472_s15 = scalar_lea.hbm %s557_s3, 512 }
 0x143   :  { %p473_p7 = scmp.ne.s32.totalorder %s557_s3, %s472_s15  ;;  %p476_p8 = scmp.lt.u32.totalorder %s472_s15, %s557_s3 }
 0x145   :  { %p478_p9 = pnand %p476_p8, %p473_p7 }
 0x147   :  { %481 = shalt.err (!%p478_p9)
}
 0x148   :  { %s493_s20 = smov 256   ;;  %s494_s21 = smov 16  }
 0x149   :  { %317 = dma.vmem_to_hbm [thread:$0]  %s312_s12, 512, %s557_s3, [#allocation4], %s493_s20, %s493_s20, %s494_s21  }
 0x14a   :  { %486 = dma.done.wait [#allocation4], 512  }
 0x14b   :  { %487 = vsyncadd [#allocation4], 4294966784 }
 0x14c   :  { %321 = vsyncpa [#allocation3], 1 }
 0x14d   :  { %322 = vsyncpa [#allocation6], 1 }
 0x14e   :  { %323 = vsyncpa [#allocation4], 1 }

</bundles_post_ra>
